<compile_context>
chip_gen: v5e
topology: v5e:2x2
jax: 0.10.0
libtpu: 0.0.40
codegen_flags: <defaults>
</compile_context>

<pallas_src>
import functools
import math

import jax
import jax.numpy as jnp
import numpy as np
from jax import lax
from jax.experimental import pallas as pl
from jax.experimental.pallas import tpu as pltpu

LANES = 128  # fused K/N of every layer is padded to one lane-dense 128-wide tile


def _round_up(x, m):
    return (x + m - 1) // m * m


# ----------------------------------------------------------------------------
# Pallas kernel: whole forward (3 fused matmuls + activations + gated blend),
# fully VMEM-resident, single invocation (no grid needed at this size).
# ----------------------------------------------------------------------------
def double_action_kernel(x_ref, w_ref, out_ref, *, d_aug, h1, out_dim):
    """x_ref  : (B, d_in)      raw input, NOT padded by the wrapper
       w_ref  : (3, 128, 128)  fused/padded weight slab; all biases folded in via a
                               constant-1 carrier lane (see pack_params)
       out_ref: (B, out_dim)
    """
    x = x_ref[...]
    batch, d_in = x.shape

    # Append the constant-1 bias-carrier lane (lane d_in) + zero pad up to the
    # sublane-aligned d_aug. One iota compare + one lane concat; no wrapper pad op.
    carrier = lax.broadcasted_iota(jnp.int32, (batch, d_aug - d_in), 1) == 0
    x_aug = jnp.concatenate([x, carrier.astype(jnp.float32)], axis=-1)      # (B, d_aug)

    # --- fused layer 1 (one MXU pass): [first.l1 | second.l1 | discrim×out_dim | carrier]
    # Static ref slice: d_aug is a multiple of 8, so this is a zero-cost view.
    y1 = jnp.dot(x_aug, w_ref[0, 0:d_aug, :], preferred_element_type=jnp.float32)

    # Discriminator columns are replicated out_dim wide, so the gate is already
    # (B, out_dim): no single-lane extract and no lane broadcast in the blend.
    gate = jax.nn.sigmoid(10.0 * y1[:, 2 * h1:2 * h1 + out_dim])

    # relu; the gate lanes are dead afterwards (zero W[1] rows) and the carrier lane
    # is exactly 1.0 (its W[0] column is zero except the bias row), so relu keeps it.
    h = jnp.maximum(y1, 0.0)

    # --- fused layer 2: block_diag(first.l2, second.l2); b2 rides the carrier row ---
    h = jnp.maximum(jnp.dot(h, w_ref[1], preferred_element_type=jnp.float32), 0.0)

    # --- fused layer 3: block_diag(first.l3, second.l3) -> [first_out | second_out] ---
    y3 = jnp.dot(h, w_ref[2], preferred_element_type=jnp.float32)
    first_out = y3[:, :out_dim]                         # identity head
    second_out = jnp.tanh(y3[:, out_dim:2 * out_dim])   # tanh head

    # gate*first - (1-gate)*second  ==  gate*(first+second) - second   (one fewer vmul)
    out_ref[...] = gate * (first_out + second_out) - second_out


def double_action_forward(x, w_slab, *, h1, out_dim):
    batch, d_in = x.shape
    d_aug = _round_up(d_in + 1, 8)
    kernel = functools.partial(double_action_kernel, d_aug=d_aug, h1=h1, out_dim=out_dim)

    cost = pl.CostEstimate(
        flops=2 * batch * (d_aug * LANES + LANES * LANES + LANES * LANES),
        transcendentals=batch * 2 * out_dim,                      # sigmoid gate + tanh head
        bytes_accessed=4 * (x.size + w_slab.size + batch * out_dim),
    )
    return pl.pallas_call(
        kernel,
        out_shape=jax.ShapeDtypeStruct((batch, out_dim), jnp.float32),
        in_specs=[pl.BlockSpec(memory_space=pltpu.MemorySpace.VMEM)] * 2,
        out_specs=pl.BlockSpec(memory_space=pltpu.MemorySpace.VMEM),
        cost_estimate=cost,
    )(x.astype(jnp.float32), w_slab)


# ----------------------------------------------------------------------------
# Host-side packing of the per-layer parameters into the fused weight slab.
# Layout (must match the kernel):
#   layer 0 cols: [0,h1) first.l1 | [h1,2h1) second.l1 | [2h1,2h1+out) discrim replicated
#                 | col c1 = carrier;  row d_in carries all layer-1 biases.
#   layer 1: block_diag(first.l2, second.l2); row c1 = [b2a | b2b | 1@c2].
#   layer 2: block_diag(first.l3, second.l3) -> [first_out | second_out]; row c2 = [b3a | b3b].
# ----------------------------------------------------------------------------
def pack_params(p, d_in, h1, h2, out_dim):
    d_aug = _round_up(d_in + 1, 8)
    c1 = 2 * h1 + out_dim     # constant-1 carrier lane in layer-1 output
    c2 = 2 * h2               # constant-1 carrier lane in layer-2 output
    assert d_aug <= LANES and c1 < LANES and c2 < LANES and 2 * out_dim <= LANES

    W = np.zeros((3, LANES, LANES), np.float32)
    w = {k: np.asarray(v, np.float32) for k, v in p.items()}

    # layer 1: x_aug @ [w1a | w1b | wd x out_dim | carrier], biases on row d_in
    W[0, :d_in, 0:h1] = w["w1a"]
    W[0, :d_in, h1:2 * h1] = w["w1b"]
    W[0, :d_in, 2 * h1:2 * h1 + out_dim] = np.repeat(w["wd"], out_dim, axis=1)
    W[0, d_in, 0:h1] = w["b1a"][0]
    W[0, d_in, h1:2 * h1] = w["b1b"][0]
    W[0, d_in, 2 * h1:2 * h1 + out_dim] = w["bd"][0, 0]
    W[0, d_in, c1] = 1.0          # carrier: its column is zero elsewhere -> stays 1 thru relu

    # layer 2: block_diag(w2a, w2b); b2 on carrier row; propagate carrier to c2
    W[1, 0:h1, 0:h2] = w["w2a"]
    W[1, h1:2 * h1, h2:2 * h2] = w["w2b"]
    W[1, c1, 0:h2] = w["b2a"][0]
    W[1, c1, h2:2 * h2] = w["b2b"][0]
    W[1, c1, c2] = 1.0

    # layer 3: block_diag(w3a, w3b) -> [first_out | second_out]; b3 on carrier row
    W[2, 0:h2, 0:out_dim] = w["w3a"]
    W[2, h2:2 * h2, out_dim:2 * out_dim] = w["w3b"]
    W[2, c2, 0:out_dim] = w["b3a"][0]
    W[2, c2, out_dim:2 * out_dim] = w["b3b"][0]

    return jnp.asarray(W)


# ----------------------------------------------------------------------------
# Deterministic parameter init mirroring the PyTorch __init__ logic.
# Weights stored pre-transposed as (in, out); biases as (1, out).
# ----------------------------------------------------------------------------
def xavier_uniform(key, fan_in, fan_out, gain):
    bound = gain * math.sqrt(6.0 / (fan_in + fan_out))
    return jax.random.uniform(key, (fan_in, fan_out), jnp.float32, -bound, bound)


def linear_bias(key, fan_in, fan_out):
    bound = 1.0 / math.sqrt(fan_in)
    return jax.random.uniform(key, (1, fan_out), jnp.float32, -bound, bound)


def init_params(key, in_dim, hidden, out_dim):
    gains = {"relu": math.sqrt(2.0), "tanh": 5.0 / 3.0, "identity": 1.0}
    keys = jax.random.split(key, 16)
    p = {}
    dims = [in_dim] + hidden + [out_dim]
    # first_net: relu, relu, identity
    for i, act in enumerate(["relu", "relu", "identity"]):
        p[f"w{i+1}a"] = xavier_uniform(keys[2 * i], dims[i], dims[i + 1], gains[act])
        p[f"b{i+1}a"] = linear_bias(keys[2 * i + 1], dims[i], dims[i + 1])
    # second_net: relu, relu, tanh
    for i, act in enumerate(["relu", "relu", "tanh"]):
        p[f"w{i+1}b"] = xavier_uniform(keys[6 + 2 * i], dims[i], dims[i + 1], gains[act])
        p[f"b{i+1}b"] = linear_bias(keys[6 + 2 * i + 1], dims[i], dims[i + 1])
    # discriminator: NormcInitializer(std=0.01): normal then /= sqrt(sum(square))
    wd = 0.01 * jax.random.normal(keys[12], (in_dim, 1), jnp.float32)
    p["wd"] = wd / jnp.sqrt(jnp.sum(jnp.square(wd)))
    p["bd"] = linear_bias(keys[13], in_dim, 1)
    return p


# ----------------------------------------------------------------------------
# Pure-JAX reference (same math as the PyTorch module) on the UNPACKED params,
# so any packing/carrier-lane mistake is caught by the assert.
# ----------------------------------------------------------------------------
def reference_forward(x, p):
    hi = jax.lax.Precision.HIGHEST
    x = x.astype(jnp.float32)
    h = jnp.maximum(jnp.dot(x, p["w1a"], precision=hi) + p["b1a"], 0.0)
    h = jnp.maximum(jnp.dot(h, p["w2a"], precision=hi) + p["b2a"], 0.0)
    first_out = jnp.dot(h, p["w3a"], precision=hi) + p["b3a"]
    g = jnp.maximum(jnp.dot(x, p["w1b"], precision=hi) + p["b1b"], 0.0)
    g = jnp.maximum(jnp.dot(g, p["w2b"], precision=hi) + p["b2b"], 0.0)
    second_out = jnp.tanh(jnp.dot(g, p["w3b"], precision=hi) + p["b3b"])
    d = jax.nn.sigmoid(10.0 * (jnp.dot(x, p["wd"], precision=hi) + p["bd"]))
    return d * first_out - (1.0 - d) * second_out


if __name__ == "__main__":
    B, D, HIDDEN, OUT = 8, 16, [32, 32], 8

    key = jax.random.PRNGKey(0)
    k_x, k_p = jax.random.split(key)
    x = jax.random.normal(k_x, (B, D), jnp.float32)           # state_nstate
    params = init_params(k_p, D, HIDDEN, OUT)
    w_slab = pack_params(params, D, HIDDEN[0], HIDDEN[1], OUT)

    out = jax.block_until_ready(
        double_action_forward(x, w_slab, h1=HIDDEN[0], out_dim=OUT))
    ref = jax.block_until_ready(reference_forward(x, params))

    assert out.shape == (B, OUT)
    np.testing.assert_allclose(np.asarray(out), np.asarray(ref), rtol=1e-4, atol=1e-4)

    print("KERNEL_OK")
</pallas_src>

<mosaic_0001>
module attributes {stable_mosaic.version = 11 : i64} {
  func.func @double_action_kernel(%arg0: memref<8x16xf32, #tpu.memory_space<vmem>>, %arg1: memref<3x128x128xf32, #tpu.memory_space<vmem>>, %arg2: memref<8x8xf32, #tpu.memory_space<vmem>>) attributes {dimension_semantics = [], scalar_prefetch = 0 : i64, scratch_operands = 0 : i64, tpu.core_type = #tpu.core_type<tc>} {
    %c0 = arith.constant 0 : index
    %c0_0 = arith.constant 0 : index
    %0 = vector.load %arg0[%c0, %c0_0] : memref<8x16xf32, #tpu.memory_space<vmem>>, vector<8x16xf32>
    %1 = tpu.iota {dimensions = array<i32: 1>} : vector<8x8xi32>
    %c0_i32 = arith.constant 0 : i32
    %2 = vector.broadcast %c0_i32 : i32 to vector<8x8xi32>
    %3 = arith.cmpi eq, %1, %2 : vector<8x8xi32>
    %4 = arith.extui %3 : vector<8x8xi1> to vector<8x8xi32>
    %5 = arith.sitofp %4 : vector<8x8xi32> to vector<8x8xf32>
    %6 = tpu.concatenate %0, %5 in 1 : vector<8x16xf32>, vector<8x8xf32> -> vector<8x24xf32>
    %c0_1 = arith.constant 0 : index
    %c0_2 = arith.constant 0 : index
    %c0_3 = arith.constant 0 : index
    %7 = vector.load %arg1[%c0_1, %c0_2, %c0_3] : memref<3x128x128xf32, #tpu.memory_space<vmem>>, vector<1x24x128xf32>
    %8 = vector.shape_cast %7 : vector<1x24x128xf32> to vector<24x128xf32>
    %cst = arith.constant dense<0.000000e+00> : vector<8x128xf32>
    %9 = tpu.matmul %6, %8, %cst {dimension_numbers = #tpu.dot_dimension_numbers<[1], [0], [0], [1], [0, 0, 1, 1], [], []>} : vector<8x24xf32>, vector<24x128xf32>, vector<8x128xf32> -> vector<8x128xf32>
    %10 = vector.extract_strided_slice %9 {offsets = [0, 64], sizes = [8, 8], strides = [1, 1]} : vector<8x128xf32> to vector<8x8xf32>
    %cst_4 = arith.constant 1.000000e+01 : f32
    %11 = vector.broadcast %cst_4 : f32 to vector<8x8xf32>
    %12 = arith.mulf %11, %10 : vector<8x8xf32>
    %13 = arith.negf %12 : vector<8x8xf32>
    %14 = math.exp %13 : vector<8x8xf32>
    %cst_5 = arith.constant 1.000000e+00 : f32
    %15 = vector.broadcast %cst_5 : f32 to vector<8x8xf32>
    %16 = arith.addf %15, %14 : vector<8x8xf32>
    %17 = arith.divf %15, %16 : vector<8x8xf32>
    %cst_6 = arith.constant 0.000000e+00 : f32
    %18 = vector.broadcast %cst_6 : f32 to vector<8x128xf32>
    %19 = arith.maximumf %9, %18 : vector<8x128xf32>
    %c1 = arith.constant 1 : index
    %c0_7 = arith.constant 0 : index
    %c0_8 = arith.constant 0 : index
    %20 = vector.load %arg1[%c1, %c0_7, %c0_8] : memref<3x128x128xf32, #tpu.memory_space<vmem>>, vector<1x128x128xf32>
    %21 = vector.shape_cast %20 : vector<1x128x128xf32> to vector<128x128xf32>
    %cst_9 = arith.constant dense<0.000000e+00> : vector<8x128xf32>
    %22 = tpu.matmul %19, %21, %cst_9 {dimension_numbers = #tpu.dot_dimension_numbers<[1], [0], [0], [1], [0, 0, 1, 1], [], []>} : vector<8x128xf32>, vector<128x128xf32>, vector<8x128xf32> -> vector<8x128xf32>
    %cst_10 = arith.constant 0.000000e+00 : f32
    %23 = vector.broadcast %cst_10 : f32 to vector<8x128xf32>
    %24 = arith.maximumf %22, %23 : vector<8x128xf32>
    %c2 = arith.constant 2 : index
    %c0_11 = arith.constant 0 : index
    %c0_12 = arith.constant 0 : index
    %25 = vector.load %arg1[%c2, %c0_11, %c0_12] : memref<3x128x128xf32, #tpu.memory_space<vmem>>, vector<1x128x128xf32>
    %26 = vector.shape_cast %25 : vector<1x128x128xf32> to vector<128x128xf32>
    %cst_13 = arith.constant dense<0.000000e+00> : vector<8x128xf32>
    %27 = tpu.matmul %24, %26, %cst_13 {dimension_numbers = #tpu.dot_dimension_numbers<[1], [0], [0], [1], [0, 0, 1, 1], [], []>} : vector<8x128xf32>, vector<128x128xf32>, vector<8x128xf32> -> vector<8x128xf32>
    %28 = vector.extract_strided_slice %27 {offsets = [0, 0], sizes = [8, 8], strides = [1, 1]} : vector<8x128xf32> to vector<8x8xf32>
    %29 = vector.extract_strided_slice %27 {offsets = [0, 8], sizes = [8, 8], strides = [1, 1]} : vector<8x128xf32> to vector<8x8xf32>
    %30 = math.tanh %29 : vector<8x8xf32>
    %31 = arith.addf %28, %30 : vector<8x8xf32>
    %32 = arith.mulf %17, %31 : vector<8x8xf32>
    %33 = arith.subf %32, %30 : vector<8x8xf32>
    %c0_14 = arith.constant 0 : index
    %c0_15 = arith.constant 0 : index
    %34 = vector.load %arg2[%c0_14, %c0_15] : memref<8x8xf32, #tpu.memory_space<vmem>>, vector<8x8xf32>
    tpu.vector_store %arg2[%c0_14, %c0_15], %33 {strides = array<i32>} : memref<8x8xf32, #tpu.memory_space<vmem>>, vector<8x8xf32>,
    return
  }
}

</mosaic_0001>

<bundles_post_ra>
// kernel: tpu_custom_call.1
= control target key start
LH: loop header
LB: loop body
LE: loop exit
PB: predicated region body
PF: predicated region fallthrough
CT: control target
= control target key end

     0   :  { %7 = vsyncpa [#allocation3], 0  ;;  %s347_s0 = inlined_call_operand.hbm [shape: f32[8,16], index: 0, kind: input, shape index: {}]   ;;  %s348_s1 = inlined_call_operand.hbm [shape: f32[3,128,128], index: 1, kind: input, shape index: {}]   ;;  %s349_s2 = inlined_call_operand.hbm [shape: f32[8,8], index: 2, kind: output, shape index: {}]  }
   0x1   :  { %8 = vsyncpa [#allocation6], 0 }
   0x2   :  { %9 = vsyncpa [#allocation4], 0  ;;  %s15_s11 = sshll.u32 %s347_s0, 4  ;;  %s313_s12 = smov [#allocation2]   ;;  %s16_s11 = int_to_ptr.hbm [resolvable:$true] %s15_s11 }
   0x3   :  { %s17_s13 = sshll.u32 %s313_s12, 4  ;;  %s25_s16 = sshll.u32 %s348_s1, 4  ;;  %s18_s13 = int_to_ptr.vmem [resolvable:$true] %s17_s13  ;;  %s26_s16 = int_to_ptr.hbm [resolvable:$true] %s25_s16 }
   0x4   :  { %20 = dma.hbm_to_vmem [thread:$0]  %s16_s11, 128, %s18_s13, [#allocation3]  }
   0x5   :  { %s314_s17 = smov [#allocation5]   ;;  %s315_s19 = smov 128  }
   0x6   :  { %s27_s18 = sshll.u32 %s314_s17, 4  ;;  %s316_s20 = smov 8   ;;  %s28_s18 = int_to_ptr.vmem [resolvable:$true] %s27_s18 }
   0x7   :  { %33 = dma.hbm_to_vmem [thread:$0]  %s26_s16, 6144, %s28_s18, [#allocation6], %s315_s19, %s315_s19, %s316_s20  }
   0x8   :  { %307 = dma.done.wait [#allocation3], 128  }
   0x9   :  { %308 = vsyncadd [#allocation3], 4294967168  ;;  %v43_v0 = vlaneseq }
   0xa   :  { %309 = dma.done.wait [#allocation6], 6144  }
   0xb   :  { %310 = vsyncadd [#allocation6], 4294961152  ;;  %v44_v1 = vand.u32 127, %v43_v0  ;;  %v317_v2 = vmov 0.0   ;;  %s318_s0 = smov 16   ;;  %v56_v4 = vld [vmem:[#allocation5 + $0x10] sm:$0xff] }
   0xc   :  { %v55_v5 = vld [vmem:[#allocation5 + $0x8] sm:$0xff]  ;;  %74 = vmatpush.msra.mxu0 %v56_v4  ;;  %v54_v6 = vld [vmem:[#allocation5] sm:$0xff]  ;;  %v118_v7 = vld [vmem:[#allocation5 + $0xf8] sm:$0xff]  ;;  %vm52_vm1 = vcmask 130048   ;;  %vm57_vm2 = vcmask 195584   ;;  %s319_s1 = smov 120  }
   0xd   :  { %vm45_vm0 = vcmp.eq.s32.totalorder %v44_v1, 0  ;;  %v117_v8 = vld [vmem:[#allocation5 + $0xf0] sm:$0xff]  ;;  %119 = vmatpush.msra.mxu1 %v118_v7  ;;  %v116_v9 = vld [vmem:[#allocation5 + $0xe8] sm:$0xff]  ;;  %v115_v10 = vld [vmem:[#allocation5 + $0xe0] sm:$0xff]  ;;  %s320_s21 = smov 64   ;;  %s321_s22 = smov 56  }
   0xe   :  { %v216_v3 = vsel %vm45_vm0, 1.0, %v317_v2  ;;  %75 = vmatpush.msra.mxu0 %v55_v5  ;;  %v114_v11 = vld [vmem:[#allocation5 + $0xd8] sm:$0xff]  ;;  %v113_v12 = vld [vmem:[#allocation5 + $0xd0] sm:$0xff]  ;;  %v112_v13 = vld [vmem:[#allocation5 + $0xc8] sm:$0xff]  ;;  %s322_s23 = smov [#allocation7]   ;;  %s205_s27 = sshll.u32 %s349_s2, 4  ;;  %s206_s27 = int_to_ptr.hbm [resolvable:$true] %s205_s27 }
   0xf   :  { %49 = vrot.lane.b32.xlu0 %v216_v3, %s318_s0  ;;  %120 = vmatpush.msra.mxu1 %v117_v8  ;;  %v111_v14 = vld [vmem:[#allocation5 + $0xc0] sm:$0xff]  ;;  %v110_v15 = vld [vmem:[#allocation5 + $0xb8] sm:$0xff]  ;;  %v109_v16 = vld [vmem:[#allocation5 + $0xb0] sm:$0xff]  ;;  %s203_s24 = sshll.u32 %s322_s23, 4  ;;  %vm196_vm7 = vcmask 64512   ;;  %s204_s24 = int_to_ptr.vmem [resolvable:$true] %s203_s24 }
  0x10   :  { %76 = vmatpush.msra.mxu0 %v54_v6  ;;  %v108_v17 = vld [vmem:[#allocation5 + $0xa8] sm:$0xff]  ;;  %v107_v18 = vld [vmem:[#allocation5 + $0xa0] sm:$0xff]  ;;  %v106_v19 = vld [vmem:[#allocation5 + $0x98] sm:$0xff] }
  0x11   :  { %121 = vmatpush.msra.mxu1 %v116_v9  ;;  %v105_v20 = vld [vmem:[#allocation5 + $0x90] sm:$0xff]  ;;  %v42_v21 = vld [vmem:[#allocation2] sm:$0xff]  ;;  %v104_v24 = vld [vmem:[#allocation5 + $0x88] sm:$0xff] }
  0x12   :  { %v103_v25 = vld [vmem:[#allocation5 + $0x80] sm:$0xff]  ;;  %v156_v26 = vld [vmem:[#allocation5 + $0x178] sm:$0xff]  ;;  %v155_v27 = vld [vmem:[#allocation5 + $0x170] sm:$0xff] }
  0x13   :  { %122 = vmatpush.msra.mxu1 %v115_v10  ;;  %157 = vmatpush.msra.mxu2 %v156_v26  ;;  %v154_v28 = vld [vmem:[#allocation5 + $0x168] sm:$0xff]  ;;  %v153_v29 = vld [vmem:[#allocation5 + $0x160] sm:$0xff]  ;;  %v152_v30 = vld [vmem:[#allocation5 + $0x158] sm:$0xff] }
  0x14   :  { %v151_v31 = vld [vmem:[#allocation5 + $0x150] sm:$0xff]  ;;  %v150_v32 = vld [vmem:[#allocation5 + $0x148] sm:$0xff]  ;;  %v149_v33 = vld [vmem:[#allocation5 + $0x140] sm:$0xff] }
  0x15   :  { %123 = vmatpush.msra.mxu1 %v114_v11  ;;  %158 = vmatpush.msra.mxu2 %v155_v27  ;;  %v148_v34 = vld [vmem:[#allocation5 + $0x138] sm:$0xff]  ;;  %v147_v35 = vld [vmem:[#allocation5 + $0x130] sm:$0xff]  ;;  %v146_v37 = vld [vmem:[#allocation5 + $0x128] sm:$0xff] }
  0x16   :  { %v145_v39 = vld [vmem:[#allocation5 + $0x120] sm:$0xff]  ;;  %v144_v40 = vld [vmem:[#allocation5 + $0x118] sm:$0xff]  ;;  %v143_v41 = vld [vmem:[#allocation5 + $0x110] sm:$0xff] }
  0x17   :  { %124 = vmatpush.msra.mxu1 %v113_v12  ;;  %159 = vmatpush.msra.mxu2 %v154_v28  ;;  %v142_v42 = vld [vmem:[#allocation5 + $0x108] sm:$0xff]  ;;  %v141_v43 = vld [vmem:[#allocation5 + $0x100] sm:$0xff] }
  0x19   :  { %125 = vmatpush.msra.mxu1 %v112_v13  ;;  %160 = vmatpush.msra.mxu2 %v153_v29 }
  0x1b   :  { %126 = vmatpush.msra.mxu1 %v111_v14  ;;  %161 = vmatpush.msra.mxu2 %v152_v30 }
  0x1d   :  { %127 = vmatpush.msra.mxu1 %v110_v15  ;;  %162 = vmatpush.msra.mxu2 %v151_v31 }
  0x1f   :  { %128 = vmatpush.msra.mxu1 %v109_v16  ;;  %163 = vmatpush.msra.mxu2 %v150_v32 }
  0x21   :  { %129 = vmatpush.msra.mxu1 %v108_v17  ;;  %164 = vmatpush.msra.mxu2 %v149_v33 }
  0x23   :  { %130 = vmatpush.msra.mxu1 %v107_v18  ;;  %165 = vmatpush.msra.mxu2 %v148_v34 }
  0x25   :  { %131 = vmatpush.msra.mxu1 %v106_v19  ;;  %166 = vmatpush.msra.mxu2 %v147_v35 }
  0x27   :  { %132 = vmatpush.msra.mxu1 %v105_v20  ;;  %167 = vmatpush.msra.mxu2 %v146_v37 }
  0x29   :  { %133 = vmatpush.msra.mxu1 %v104_v24  ;;  %168 = vmatpush.msra.mxu2 %v145_v39 }
  0x2b   :  { %134 = vmatpush.msra.mxu1 %v103_v25  ;;  %169 = vmatpush.msra.mxu2 %v144_v40 }
  0x2d   :  { %170 = vmatpush.msra.mxu2 %v143_v41 }
  0x2f   :  { %171 = vmatpush.msra.mxu2 %v142_v42 }
  0x31   :  { %172 = vmatpush.msra.mxu2 %v141_v43 }
  0x81   :  { %v50_v22 = vpop.permute.xlu0 %49 }
  0x82   :  { %v53_v23 = vsel %vm52_vm1, %v42_v21, %v50_v22 }
  0x83   :  { %217 = vmatmul.msk.f32.vlgmr.msra.gmra.mxu0 %vm57_vm2, %v53_v23 }
 0x100   :  { %v78_v36 = vpop.f32.mrf.mxu0 }
 0x101   :  { %v101_v38 = vmax.f32 %v78_v36, 0.0  ;;  %v218_v50 = vmul.f32 -10.0, %v78_v36 }
 0x103   :  { %135 = vmatmul.f32.vlgmr.msra.gmra.mxu1 %v101_v38  ;;  %v83_v51 = vmul.f32 1.442695, %v218_v50 }
 0x180   :  { %v136_v44 = vpop.f32.mrf.mxu1 }
 0x181   :  { %v139_v45 = vmax.f32 %v136_v44, 0.0 }
 0x183   :  { %173 = vmatmul.f32.vlgmr.msra.gmra.mxu2 %v139_v45 }
 0x206   :  { %v174_v46 = vpop.f32.mrf.mxu2 }
 0x207   :  { %229 = vtanh.f32 %v174_v46 }
 0x208   :  { %231 = vpow2.f32 %v83_v51 }
 0x20d   :  { %v230_v47 = vpop.eup %229 }
 0x20e   :  { %179 = vrot.lane.b32.xlu0 %v230_v47, %s319_s1  ;;  %v232_v52 = vpop.eup %231 }
 0x20f   :  { %v85_v53 = vadd.f32 1.0, %v232_v52 }
 0x211   :  { %233 = vrcp.f32 %v85_v53  ;;  %v97_v60 = vand.u32 2147483648, %v85_v53  ;;  %vm91_vm4 = vweird.f32 %v85_v53  ;;  %v95_v61 = vand.u32 2147483647, %v85_v53 }
 0x213   :  { %v98_v63 = vor.u32 1.1754944e-38, %v97_v60  ;;  %vm96_vm6 = vcmp.eq.f32.partialorder %v95_v61, 8.507059e+37 }
 0x217   :  { %v234_v54 = vpop.eup %233 }
 0x218   :  { %v87_v55 = vmul.f32 %v234_v54, %v85_v53  ;;  %vm92_vm3 = vweird.f32 %v234_v54 }
 0x219   :  { %vm93_vm5 = vmor %vm91_vm4, %vm92_vm3 }
 0x21a   :  { %v88_v56 = vsub.f32 1.0, %v87_v55 }
 0x21c   :  { %v89_v57 = vmul.f32 %v234_v54, %v88_v56 }
 0x21e   :  { %v90_v58 = vadd.f32 %v234_v54, %v89_v57 }
 0x220   :  { %v94_v62 = vsel %vm93_vm5, %v234_v54, %v90_v58 }
 0x221   :  { %v99_v0 = vsel %vm96_vm6, %v98_v63, %v94_v62 }
 0x280   :  { %v180_v48 = vpop.permute.xlu0 %179 }
 0x281   :  { %v182_v49 = vadd.f32 %v180_v48, %v174_v46 }
 0x283   :  { %184 = vrot.lane.b32.xlu1 %v182_v49, %s320_s21 }
 0x28b   :  { %188 = vrot.lane.b32.xlu1 %v230_v47, %s321_s22 }
 0x2f5   :  { %v185_v59 = vpop.permute.xlu1 %184 }
 0x2f6   :  { %v187_v1 = vmul.f32 %v185_v59, %v99_v0 }
 0x2fd   :  { %v189_v2 = vpop.permute.xlu1 %188 }
 0x2fe   :  { %v191_v3 = vsub.f32 %v187_v1, %v189_v2 }
 0x300   :  { %193 = vrot.lane.b32.xlu2 %v191_v3, %s320_s21 }
 0x35a   :  { %v194_v4 = vpop.permute.xlu2 %193 }
 0x35b   :  { %197 = vst.msk [vmem:[#allocation7] sm:$0xff] %vm196_vm7, %v194_v4 }
 0x35c   :  { %208 = dma.vmem_to_hbm [thread:$0]  %s204_s24, 128, %s206_s27, [#allocation4]  }
 0x35d   :  { %311 = dma.done.wait [#allocation4], 128  }
 0x35e   :  { %312 = vsyncadd [#allocation4], 4294967168 }
 0x35f   :  { %213 = vsyncpa [#allocation3], 1 }
 0x360   :  { %214 = vsyncpa [#allocation6], 1 }
 0x361   :  { %215 = vsyncpa [#allocation4], 1 }

</bundles_post_ra>
